<compile_context>
chip_gen: v7x
topology: tpu7x:2x2x1
jax: 0.10.0
libtpu: 0.0.40
codegen_flags: <defaults>
</compile_context>

<pallas_src>
import functools

import numpy as np
import jax
import jax.numpy as jnp
from jax.experimental import pallas as pl
from jax.experimental.pallas import tpu as pltpu


def _round_up(x: int, m: int) -> int:
    return (x + m - 1) // m * m


def _phase_kernel(cs_ref, xr_ref, xi_ref, o_ref):
    # cs_ref: (2, A) float32 in SMEM; xr/xi/o: (TB, TT) float32 in VMEM.
    a = pl.program_id(2)
    c = cs_ref[0, a]
    s = cs_ref[1, a]
    # Re(e^{i alpha} * (xr + i xi)) = cos(alpha)*xr - sin(alpha)*xi
    o_ref[...] = c * xr_ref[...] - s * xi_ref[...]


@functools.partial(jax.jit, static_argnums=(1,))
def phase_operator(x: jax.Array, A: int) -> jax.Array:
    """x: complex array of shape (B, 1, T) -> float32 array (B, A, T)."""
    assert x.ndim == 3 and x.shape[1] == 1, "expected (B, 1, T) complex input"
    B, _, T = x.shape

    # Deterministic parameters (mirrors the module's __init__).
    alphas = np.linspace(0.0, np.pi, A, endpoint=False)
    cs = jnp.asarray(np.stack([np.cos(alphas), np.sin(alphas)]),
                     dtype=jnp.float32)                       # (2, A)

    # ---- tile selection -------------------------------------------------
    TT_MAX = 8192                       # lanes; keeps 6*TB*TT*4 <= ~6.3 MiB
    Bp = _round_up(B, 8)
    TB = 32 if Bp % 32 == 0 else (16 if Bp % 16 == 0 else 8)
    Tp = _round_up(T, 128)
    if Tp <= TT_MAX:
        TT = Tp
    else:
        TT = TT_MAX
        Tp = _round_up(T, TT)
    nB, nT = Bp // TB, Tp // TT

    # ---- real/imag planes (inside the same jit: XLA produces both in one
    # pass over x and fuses the padding) ----------------------------------
    # TODO(synk): fuse the complex deinterleave into the kernel itself (needs
    # lane-strided loads of the bitcast-interleaved data) to drop one more
    # HBM round-trip of the input.
    xr = jnp.real(x[:, 0, :]).astype(jnp.float32)
    xi = jnp.imag(x[:, 0, :]).astype(jnp.float32)
    if (Bp, Tp) != (B, T):
        pad = ((0, Bp - B), (0, Tp - T))
        xr = jnp.pad(xr, pad)
        xi = jnp.pad(xi, pad)

    plane_spec = pl.BlockSpec((TB, TT), lambda bi, tj, a: (bi, tj))

    out_flat = pl.pallas_call(
        _phase_kernel,
        out_shape=jax.ShapeDtypeStruct((Bp, A * Tp), jnp.float32),
        grid_spec=pltpu.PrefetchScalarGridSpec(
            num_scalar_prefetch=0,
            grid=(nB, nT, A),
            in_specs=[
                pl.BlockSpec(memory_space=pltpu.SMEM),   # (2, A) cos/sin table
                plane_spec,                              # Re(x)
                plane_spec,                              # Im(x)
            ],
            out_specs=pl.BlockSpec((TB, TT),
                                   lambda bi, tj, a: (bi, a * nT + tj)),
        ),
        compiler_params=pltpu.CompilerParams(
            dimension_semantics=("parallel", "parallel", "arbitrary")),
    )(cs, xr, xi)

    # Free reshape (row-major compatible), then crop any padding.
    out = out_flat.reshape(Bp, A, Tp)
    return out[:B, :, :T]


def phase_operator_ref(x: jax.Array, A: int) -> jax.Array:
    alphas = np.linspace(0.0, np.pi, A, endpoint=False)
    phases = (np.cos(alphas) + 1j * np.sin(alphas)).astype(np.complex64)
    phases = jnp.asarray(phases)[:, None]          # (A, 1)
    return jnp.real(phases * x)                    # (B, A, T)


if __name__ == "__main__":
    key = jax.random.PRNGKey(0)

    # Aligned case and a padded (non-multiple-of-8/128, odd-A) case.
    for (B, A, T) in [(2, 4, 128), (3, 5, 200)]:
        kr, ki = jax.random.split(jax.random.fold_in(key, B * 1000 + T))
        x = (jax.random.normal(kr, (B, 1, T), dtype=jnp.float32)
             + 1j * jax.random.normal(ki, (B, 1, T), dtype=jnp.float32)
             ).astype(jnp.complex64)

        out = jax.block_until_ready(phase_operator(x, A))
        assert out.shape == (B, A, T) and out.dtype == jnp.float32

        ref = phase_operator_ref(x, A)
        np.testing.assert_allclose(np.asarray(out), np.asarray(ref),
                                   rtol=1e-5, atol=1e-5)

    print("KERNEL_OK")
</pallas_src>

<mosaic_0001>
module attributes {stable_mosaic.version = 11 : i64} {
  func.func @_phase_kernel(%arg0: i32, %arg1: i32, %arg2: i32, %arg3: memref<2x4xf32, #tpu.memory_space<smem>>, %arg4: memref<8x128xf32, #tpu.memory_space<vmem>>, %arg5: memref<8x128xf32, #tpu.memory_space<vmem>>, %arg6: memref<8x128xf32, #tpu.memory_space<vmem>>) attributes {dimension_semantics = [#tpu.dimension_semantics<parallel>, #tpu.dimension_semantics<parallel>, #tpu.dimension_semantics<arbitrary>], iteration_bounds = array<i64: 1, 1, 4>, scalar_prefetch = 0 : i64, scratch_operands = 0 : i64, tpu.core_type = #tpu.core_type<tc>, window_params = [{transform_indices = @transform_0, window_bounds = array<i64: 2, 4>}, {transform_indices = @transform_1, window_bounds = array<i64: 8, 128>}, {transform_indices = @transform_2, window_bounds = array<i64: 8, 128>}, {transform_indices = @transform_3, window_bounds = array<i64: 8, 128>}]} {
    %c0 = arith.constant 0 : index
    %0 = arith.index_cast %arg2 : i32 to index
    %1 = memref.load %arg3[%c0, %0] : memref<2x4xf32, #tpu.memory_space<smem>>
    %c1 = arith.constant 1 : index
    %2 = arith.index_cast %arg2 : i32 to index
    %3 = memref.load %arg3[%c1, %2] : memref<2x4xf32, #tpu.memory_space<smem>>
    %c0_0 = arith.constant 0 : index
    %c0_1 = arith.constant 0 : index
    %4 = vector.load %arg4[%c0_0, %c0_1] : memref<8x128xf32, #tpu.memory_space<vmem>>, vector<8x128xf32>
    %5 = vector.broadcast %1 : f32 to vector<8x128xf32>
    %6 = arith.mulf %5, %4 : vector<8x128xf32>
    %c0_2 = arith.constant 0 : index
    %c0_3 = arith.constant 0 : index
    %7 = vector.load %arg5[%c0_2, %c0_3] : memref<8x128xf32, #tpu.memory_space<vmem>>, vector<8x128xf32>
    %8 = vector.broadcast %3 : f32 to vector<8x128xf32>
    %9 = arith.mulf %8, %7 : vector<8x128xf32>
    %10 = arith.subf %6, %9 : vector<8x128xf32>
    %c0_4 = arith.constant 0 : index
    %c0_5 = arith.constant 0 : index
    %11 = vector.load %arg6[%c0_4, %c0_5] : memref<8x128xf32, #tpu.memory_space<vmem>>, vector<8x128xf32>
    tpu.vector_store %arg6[%c0_4, %c0_5], %10 {strides = array<i32>} : memref<8x128xf32, #tpu.memory_space<vmem>>, vector<8x128xf32>,
    return
  }
  func.func @transform_0(%arg0: i32, %arg1: i32, %arg2: i32) -> (i32, i32) {
    %c0_i32 = arith.constant 0 : i32
    %c0_i32_0 = arith.constant 0 : i32
    %c0_i32_1 = arith.constant 0 : i32
    return %c0_i32, %c0_i32_0 : i32, i32
  }
  func.func @transform_1(%arg0: i32, %arg1: i32, %arg2: i32) -> (i32, i32) {
    %c0_i32 = arith.constant 0 : i32
    return %arg0, %arg1 : i32, i32
  }
  func.func @transform_2(%arg0: i32, %arg1: i32, %arg2: i32) -> (i32, i32) {
    %c0_i32 = arith.constant 0 : i32
    return %arg0, %arg1 : i32, i32
  }
  func.func @transform_3(%arg0: i32, %arg1: i32, %arg2: i32) -> (i32, i32) {
    %c1_i32 = arith.constant 1 : i32
    %0 = arith.muli %arg2, %c1_i32 : i32
    %1 = arith.addi %0, %arg1 : i32
    %c0_i32 = arith.constant 0 : i32
    return %arg0, %1 : i32, i32
  }
}

</mosaic_0001>

<bundles_post_ra>
// kernel: custom-call.1
= control target key start
LH: loop header
LB: loop body
LE: loop exit
PB: predicated region body
PF: predicated region fallthrough
CT: control target
= control target key end

     0   :  { %s59_s0 = inlined_call_operand.hbm [shape: c64[2,1,128], index: 0, kind: input, shape index: {}]   ;;  %s60_s1 = inlined_call_operand.vmem [shape: f32[2,1,128], index: 1, kind: output, shape index: {}]  }
   0x1   :  { %s2_s8 = scalar_lea.hbm %s59_s0, 32 }
   0x2   :  { %3 = vsyncpa [#allocation0], 0  ;;  %s4_s11 = sshll.u32 %s60_s1, 4  ;;  %s34_s14 = scalar_lea.hbm %s59_s0, 64  ;;  %s5_s11 = int_to_ptr.vmem [resolvable:$true] %s4_s11 }
   0x3   :  { %p11_p0 = scmp.ne.s32.totalorder %s2_s8, %s34_s14  ;;  %p13_p1 = scmp.lt.u32.totalorder %s2_s8, %s59_s0 }
   0x4   :  { %p14_p2 = scmp.lt.u32.totalorder %s34_s14, %s34_s14  ;;  %p16_p4 = scmp.lt.u32.totalorder %s34_s14, %s2_s8 }
   0x6   :  { %p15_p3 = por %p14_p2, %p13_p1 }
   0x8   :  { %p17_p5 = por %p16_p4, %p15_p3 }
   0xa   :  { %p18_p6 = pnand %p17_p5, %p11_p0 }
   0xc   :  { %21 = shalt.err (!%p18_p6)  }
   0xd   :  { %s22_s17 = scalar_lea.vmem %s5_s11, 32  ;;  %p27_p8 = scmp.lt.s32.totalorder %s5_s11, %s5_s11 }
   0xe   :  { %p23_p7 = scmp.ne.s32.totalorder %s5_s11, %s22_s17  ;;  %p28_p9 = scmp.lt.s32.totalorder %s22_s17, %s22_s17 }
  0x10   :  { %p29_p10 = por %p28_p9, %p27_p8 }
  0x12   :  { %p30_p11 = pnand %p29_p10, %p23_p7 }
  0x14   :  { %33 = shalt.err (!%p30_p11)  }
  0x15   :  { %7 = dma.hbm_to_vmem [thread:$0]  %s2_s8, 32, %s5_s11, [#allocation0] }
  0x16   :  { %35 = dma.done.wait [#allocation0], 32  }
  0x17   :  { %36 = vsyncadd [#allocation0], 4294967264 }
  0x18   :  { %9 = vsyncpa [#allocation0], 1 }

// kernel: custom-call
= control target key start
LH: loop header
LB: loop body
LE: loop exit
PB: predicated region body
PF: predicated region fallthrough
CT: control target
= control target key end

     0   :  { %2 = vsyncpa [#allocation0], 0  ;;  %s61_s0 = inlined_call_operand.hbm [shape: c64[2,1,128], index: 0, kind: input, shape index: {}]   ;;  %s62_s1 = inlined_call_operand.vmem [shape: f32[2,1,128], index: 1, kind: output, shape index: {}]  }
   0x1   :  { %s3_s8 = sshll.u32 %s62_s1, 4  ;;  %s9_s11 = scalar_lea.hbm %s61_s0, 32  ;;  %s4_s8 = int_to_ptr.vmem [resolvable:$true] %s3_s8 }
   0x2   :  { %p10_p0 = scmp.ne.s32.totalorder %s61_s0, %s9_s11  ;;  %s11_s16 = scalar_lea.hbm %s61_s0, 64 }
   0x3   :  { %p12_p1 = scmp.lt.u32.totalorder %s11_s16, %s9_s11  ;;  %p13_p2 = scmp.lt.u32.totalorder %s9_s11, %s61_s0 }
   0x5   :  { %p14_p3 = por %p13_p2, %p12_p1 }
   0x7   :  { %p15_p4 = pnand %p14_p3, %p10_p0 }
   0x9   :  { %18 = shalt.err (!%p15_p4)  }
   0xa   :  { %s19_s1 = scalar_lea.vmem %s4_s8, 32  ;;  %p24_p6 = scmp.lt.s32.totalorder %s4_s8, %s4_s8 }
   0xb   :  { %p20_p5 = scmp.ne.s32.totalorder %s4_s8, %s19_s1  ;;  %p25_p7 = scmp.lt.s32.totalorder %s19_s1, %s19_s1 }
   0xd   :  { %p26_p8 = por %p25_p7, %p24_p6 }
   0xf   :  { %p27_p9 = pnand %p26_p8, %p20_p5 }
  0x11   :  { %30 = shalt.err (!%p27_p9)  }
  0x12   :  { %6 = dma.hbm_to_vmem [thread:$0]  %s61_s0, 32, %s4_s8, [#allocation0] }
  0x13   :  { %31 = dma.done.wait [#allocation0], 32  }
  0x14   :  { %32 = vsyncadd [#allocation0], 4294967264 }
  0x15   :  { %8 = vsyncpa [#allocation0], 1 }

// kernel: phase_operator.1
= control target key start
LH: loop header
LB: loop body
LE: loop exit
PB: predicated region body
PF: predicated region fallthrough
CT: control target
= control target key end

     0   :  { %8 = vsyncpa [#allocation3], 0  ;;  %s503_s12 = smov 0   ;;  %s505_s13 = smov 0   ;;  %s568_s0 = inlined_call_operand.vmem [shape: f32[2,4], index: 0, kind: input, shape index: {}]   ;;  %s569_s1 = inlined_call_operand.vmem [shape: f32[8,128], index: 1, kind: input, shape index: {}]   ;;  %s570_s2 = inlined_call_operand.vmem [shape: f32[8,128], index: 2, kind: input, shape index: {}]   ;;  %s571_s3 = inlined_call_operand.vmem [shape: f32[8,512], index: 3, kind: output, shape index: {}]  }
   0x1   :  { %s507_s14 = smov 0  }
   0x2 LB: > { %s390_s15 = sadd.s32 4294967295, %s480_s14   ;;  %s26_s16 = sadd.s32 1, %s476_s13  ;;  %s480_s14 = sphi %s507_s14, %s14_s14   ;;  %s476_s13 = sphi %s505_s13, %s575_s13   ;;  %s472_s12 = sphi %s503_s12, %s574_s12  }
   0x3   : > { %p27_p0 = scmp.ge.s32.totalorder %s26_s16, 4  ;;  %p392_p1 = scmp.ge.s32.totalorder %s480_s14, 1 }
   0x4   : > { %p145_p2 = scmp.lt.s32.totalorder %s480_s14, 5  ;;  %p528_p4 = scmp.eq.s32.totalorder %s390_s15, 0 }
   0x5   : > { %s577_s16 = smov (%p27_p0, %s26_s16), 0  ;;  %s158_s21 = sshll.u32 %s568_s0, 4  ;;  %s159_s21 = int_to_ptr.vmem [resolvable:$true] %s158_s21 }
   0x6   : > { %p524_p3 = pnand %p392_p1, %p145_p2  ;;  %s439_s22 = scalar_lea.vmem %s159_s21, 32 }
   0x7   : > { %p440_p7 = scmp.ne.s32.totalorder %s159_s21, %s439_s22  ;;  %p447_p11 = scmp.lt.s32.totalorder %s159_s21, %s159_s21 }
   0x8   : > { %p408_p5 = pneg %p524_p3  ;;  %p448_p12 = scmp.lt.s32.totalorder %s439_s22, %s439_s22 }
   0xa   : > { %p409_p6 = pnand %p528_p4, %p408_p5  ;;  %p449_p13 = por %p448_p12, %p447_p11 }
   0xc   : > { %p441_p8 = pneg %p409_p6 }
   0xe   : > { %p442_p9 = pnand %p441_p8, %p440_p7 }
  0x10   : > { %p443_p10 = pneg %p442_p9 }
  0x12   : > { %p450_p0 = pnand %p449_p13, %p443_p10 }
  0x14   : > { %453 = shalt.err (!%p450_p0)
}
  0x15   : > { %s482_s23 = smov [#allocation2]   ;;  %191 = sbr.rel (%p524_p3) target bundleno = 48 (0x30), region = 32 }
  0x16   : > { %411 = dma.vmem_to_smem (!%p409_p6), %s159_s21, 32, %s482_s23, [#allocation3]  }
  0x1c   : > { %467 = dma.done.wait (%p528_p4), [#allocation3], 32  }
  0x1d   : > { %469 = vsyncadd (%p528_p4), [#allocation3], 4294967264 }
  0x1e   : > { %197 = sfence }
  0x1f   : > { %s253_s24 = sld [smem:[#allocation2 + %s472_s12]]  ;;  %s254_s25 = sshra.s32 %s472_s12, 7  ;;  %v262_v0 = vld [vmem:[%s569_s1] sm:$0xff] }
  0x20   : > { %s259_s26 = sand.u32 127, %s472_s12  ;;  %p246_p1 = scmp.lt.s32.totalorder %s472_s12, 3  ;;  %v265_v2 = vld [vmem:[%s570_s2] sm:$0xff] }
  0x21   : > { %s402_s27 = sshll.u32 %s254_s25, 7 }
  0x22   : > { %s403_s28 = sadd.s32 128, %s402_s27  ;;  %s579_s12 = smov (!%p246_p1, %s472_s12), 3 }
  0x23   : > { %s260_s29 = sadd.s32 %s403_s28, %s259_s26  ;;  %s398_s8 = sshll.u32 %s579_s12, 3 }
  0x24   : > { %s261_s30 = sld [smem:[#allocation2 + %s260_s29]]  ;;  %s251_s11 = scalar_lea.vmem %s571_s3, %s398_s8 }
  0x25   : > { %v263_v1 = vstv %s253_s24 }
  0x26   : > { %v264_v3 = vmul.f32 %v263_v1, %v262_v0 }
  0x2a   : > { %v266_v4 = vstv %s261_s30 }
  0x2b   : > { %v267_v5 = vmul.f32 %v266_v4, %v265_v2 }
  0x2d   : > { %v268_v6 = vsub.f32 %v264_v3, %v267_v5 }
  0x2f   : > { %269 = vst [vmem:[%s251_s11] sm:$0xff] %v268_v6 }
  0x30 PF: > { %s14_s14 = sadd.s32 1, %s480_s14   ;;  %s574_s12 = smov %s476_s13 }
  0x31   : > { %p11_p2 = scmp.ge.s32.totalorder %s14_s14, 6   ;;  %s575_s13 = smov %s577_s16 }
  0x33   :  { %13 = sbr.rel (!%p11_p2) target bundleno = 2 (0x2), region = 70 }
  0x3a   :  { %300 = vsyncpa [#allocation3], 1 }
  0x3b   :  { %302 = vsyncpa [#allocation3 + $0x1], 1 }

</bundles_post_ra>
